<compile_context>
chip_gen: v5e
topology: v5e:2x2
jax: 0.10.0
libtpu: 0.0.40
codegen_flags: <defaults>
</compile_context>

<pallas_src>
import jax
import jax.numpy as jnp
from jax.experimental import pallas as pl
from jax.experimental.pallas import tpu as pltpu


def _round_up(x, m):
    return ((x + m - 1) // m) * m


def _ode_func_kernel(h_ref, w1t_ref, b1_ref, w2t_ref, b2_ref, o_ref):
    # h_ref:   (2, TN)   lane-dense state tile (features x batch-lanes)
    # w1t_ref: (32, 2)   first-layer weight, (out, in)
    # b1_ref:  (32, 1)
    # w2t_ref: (2, 32)   second-layer weight, (out, in)
    # b2_ref:  (2, 1)
    # o_ref:   (2, TN)
    #
    # Layer 1 on the MXU (it is otherwise idle at K=2; frees VALU slots).
    z = jnp.dot(w1t_ref[...], h_ref[...],
                preferred_element_type=jnp.float32)            # (32, TN) f32
    a = jnp.tanh(z + b1_ref[...])                              # EUP, f32
    # Layer 2 on the MXU, f32 accumulation, lane-dense output.
    y = jnp.dot(w2t_ref[...], a, preferred_element_type=jnp.float32)  # (2, TN)
    o_ref[...] = (y + b2_ref[...]).astype(o_ref.dtype)


def ode_func_forward_tn(t, hT, w1, b1, w2, b2, *, block_n=32768):
    """Lane-dense Pallas equivalent of ODEFunc.forward.  `t` is ignored.

    hT: (2, N) state in (features, batch) layout  -> returns (2, N).
    w1: (2, 32), b1: (32,)   -- nn.Linear(2, 32) in (in, out) convention
    w2: (32, 2), b2: (2,)    -- nn.Linear(32, 2) in (in, out) convention

    Keep the ODE state in this (2, N) layout across integrator steps so no
    HBM transposes are ever needed.
    """
    del t  # unused, matching the PyTorch module semantics
    f_in, n = hT.shape
    assert f_in == 2, "ODEFunc expects 2-d state"

    w1t = w1.T                  # (32, 2)  tiny, resident in VMEM
    w2t = w2.T                  # (2, 32)
    b1c = b1.reshape(-1, 1)     # (32, 1)
    b2c = b2.reshape(-1, 1)     # (2, 1)

    if n <= block_n:
        # Single block equal to the full array -> no (8,128) divisibility needed.
        tile_n = n
    else:
        block_n = _round_up(block_n, 128)     # lane tiles must be 128-multiples
        grid_n = pl.cdiv(n, block_n)
        if grid_n % 2:
            # Prefer an even tile count so v7x's two TensorCores both get work.
            alt = _round_up(pl.cdiv(n, grid_n + 1), 128)
            if pl.cdiv(n, alt) % 2 == 0:
                tile_n = alt
            else:
                tile_n = min(block_n, _round_up(pl.cdiv(n, grid_n), 128))
        else:
            # Balance tiles so the ragged tail (masked, not padded) is small.
            tile_n = min(block_n, _round_up(pl.cdiv(n, grid_n), 128))
    grid_n = pl.cdiv(n, tile_n)   # partial last block is masked by Pallas (no jnp.pad pass)

    # Size the VMEM limit to the tile: double-buffered (8-sublane-padded) in/out
    # blocks plus the f32 (32, tile) z/a intermediates, capped for v7x's 64 MiB.
    itemsize = jnp.dtype(hT.dtype).itemsize
    io_bytes = 2 * 2 * 8 * tile_n * itemsize
    mid_bytes = 2 * 32 * tile_n * 4
    vmem_limit = int(min(64 * 1024 * 1024,
                         max(32 * 1024 * 1024, io_bytes + mid_bytes + (4 << 20))))

    out_t = pl.pallas_call(
        _ode_func_kernel,
        out_shape=jax.ShapeDtypeStruct((2, n), hT.dtype),
        grid=(grid_n,),
        in_specs=[
            pl.BlockSpec((2, tile_n), lambda i: (0, i)),   # hT tile (batch-sharded)
            pl.BlockSpec((32, 2), lambda i: (0, 0)),       # w1t resident in VMEM
            pl.BlockSpec((32, 1), lambda i: (0, 0)),       # b1  resident
            pl.BlockSpec((2, 32), lambda i: (0, 0)),       # w2t resident
            pl.BlockSpec((2, 1), lambda i: (0, 0)),        # b2  resident
        ],
        out_specs=pl.BlockSpec((2, tile_n), lambda i: (0, i)),
        compiler_params=pltpu.CompilerParams(
            dimension_semantics=("parallel",),
            vmem_limit_bytes=vmem_limit),
    )(hT, w1t, b1c, w2t, b2c)

    return out_t                  # (2, N), same lane-dense layout as the input


def ode_func_forward(t, h, w1, b1, w2, b2, *, block_n=32768):
    """PyTorch-layout compatibility wrapper: h is (N, 2), returns (N, 2).

    NOTE: each .T here is a full HBM read+write at large N.  Inside an
    integrator loop keep the state in (2, N) and call ode_func_forward_tn.
    """
    out_t = ode_func_forward_tn(t, h.T, w1, b1, w2, b2, block_n=block_n)
    return out_t.T


def init_params(key, dtype=jnp.float32):
    """Deterministic init mirroring torch.nn.Linear default (uniform +/- 1/sqrt(fan_in))."""
    k1, k2, k3, k4 = jax.random.split(key, 4)
    bound1 = 1.0 / jnp.sqrt(2.0)   # fan_in = 2
    bound2 = 1.0 / jnp.sqrt(32.0)  # fan_in = 32
    w1 = jax.random.uniform(k1, (2, 32), dtype, minval=-bound1, maxval=bound1)
    b1 = jax.random.uniform(k2, (32,), dtype, minval=-bound1, maxval=bound1)
    w2 = jax.random.uniform(k3, (32, 2), dtype, minval=-bound2, maxval=bound2)
    b2 = jax.random.uniform(k4, (2,), dtype, minval=-bound2, maxval=bound2)
    return w1, b1, w2, b2


def _reference(h, w1, b1, w2, b2):
    return jnp.tanh(h @ w1 + b1) @ w2 + b2


if __name__ == "__main__":
    key = jax.random.PRNGKey(0)
    kp, kh1, kh2 = jax.random.split(key, 3)

    w1, b1, w2, b2 = init_params(kp)
    t = jnp.float32(0.0)  # unused by the net

    # Small batch via the preferred lane-dense (2, N) API (single-block path).
    hT_small = jax.random.normal(kh1, (2, 8), jnp.float32)
    out_tn = jax.block_until_ready(ode_func_forward_tn(t, hT_small, w1, b1, w2, b2))
    ref_tn = _reference(hT_small.T, w1, b1, w2, b2).T
    assert out_tn.shape == (2, 8)
    assert jnp.allclose(out_tn, ref_tn, atol=1e-5, rtol=1e-5)

    # PyTorch-layout wrapper, gridded path with a ragged (masked) last tile:
    # 640 batch with block_n=256 -> 3 tiles of 256 lanes, last one half-valid.
    h_big = jax.random.normal(kh2, (640, 2), jnp.float32)
    out_big = jax.block_until_ready(
        ode_func_forward(t, h_big, w1, b1, w2, b2, block_n=256))
    ref_big = _reference(h_big, w1, b1, w2, b2)
    assert out_big.shape == (640, 2)
    assert jnp.allclose(out_big, ref_big, atol=1e-5, rtol=1e-5)

    print("KERNEL_OK")
</pallas_src>

<mosaic_0001>
module attributes {stable_mosaic.version = 11 : i64} {
  func.func @_ode_func_kernel(%arg0: i32, %arg1: memref<2x8xf32, #tpu.memory_space<vmem>>, %arg2: memref<32x2xf32, #tpu.memory_space<vmem>>, %arg3: memref<32x1xf32, #tpu.memory_space<vmem>>, %arg4: memref<2x32xf32, #tpu.memory_space<vmem>>, %arg5: memref<2x1xf32, #tpu.memory_space<vmem>>, %arg6: memref<2x8xf32, #tpu.memory_space<vmem>>) attributes {dimension_semantics = [#tpu.dimension_semantics<parallel>], iteration_bounds = array<i64: 1>, scalar_prefetch = 0 : i64, scratch_operands = 0 : i64, tpu.core_type = #tpu.core_type<tc>, window_params = [{transform_indices = @transform_0, window_bounds = array<i64: 2, 8>}, {pipeline_mode = #tpu.pipeline_mode<synchronous>, transform_indices = @transform_1, window_bounds = array<i64: 32, 2>}, {pipeline_mode = #tpu.pipeline_mode<synchronous>, transform_indices = @transform_2, window_bounds = array<i64: 32, 1>}, {pipeline_mode = #tpu.pipeline_mode<synchronous>, transform_indices = @transform_3, window_bounds = array<i64: 2, 32>}, {pipeline_mode = #tpu.pipeline_mode<synchronous>, transform_indices = @transform_4, window_bounds = array<i64: 2, 1>}, {transform_indices = @transform_5, window_bounds = array<i64: 2, 8>}]} {
    %c0 = arith.constant 0 : index
    %c0_0 = arith.constant 0 : index
    %0 = vector.load %arg2[%c0, %c0_0] : memref<32x2xf32, #tpu.memory_space<vmem>>, vector<32x2xf32>
    %c0_1 = arith.constant 0 : index
    %c0_2 = arith.constant 0 : index
    %1 = vector.load %arg1[%c0_1, %c0_2] : memref<2x8xf32, #tpu.memory_space<vmem>>, vector<2x8xf32>
    %cst = arith.constant dense<0.000000e+00> : vector<32x8xf32>
    %2 = tpu.matmul %0, %1, %cst {dimension_numbers = #tpu.dot_dimension_numbers<[1], [0], [0], [1], [0, 0, 1, 1], [], []>} : vector<32x2xf32>, vector<2x8xf32>, vector<32x8xf32> -> vector<32x8xf32>
    %c0_3 = arith.constant 0 : index
    %c0_4 = arith.constant 0 : index
    %3 = vector.load %arg3[%c0_3, %c0_4] : memref<32x1xf32, #tpu.memory_space<vmem>>, vector<32x1xf32>
    %4 = vector.broadcast %3 : vector<32x1xf32> to vector<32x8xf32>
    %5 = arith.addf %2, %4 : vector<32x8xf32>
    %6 = math.tanh %5 : vector<32x8xf32>
    %c0_5 = arith.constant 0 : index
    %c0_6 = arith.constant 0 : index
    %7 = vector.load %arg4[%c0_5, %c0_6] : memref<2x32xf32, #tpu.memory_space<vmem>>, vector<2x32xf32>
    %cst_7 = arith.constant dense<0.000000e+00> : vector<2x8xf32>
    %8 = tpu.matmul %7, %6, %cst_7 {dimension_numbers = #tpu.dot_dimension_numbers<[1], [0], [0], [1], [0, 0, 1, 1], [], []>} : vector<2x32xf32>, vector<32x8xf32>, vector<2x8xf32> -> vector<2x8xf32>
    %c0_8 = arith.constant 0 : index
    %c0_9 = arith.constant 0 : index
    %9 = vector.load %arg5[%c0_8, %c0_9] : memref<2x1xf32, #tpu.memory_space<vmem>>, vector<2x1xf32>
    %10 = vector.broadcast %9 : vector<2x1xf32> to vector<2x8xf32>
    %11 = arith.addf %8, %10 : vector<2x8xf32>
    %c0_10 = arith.constant 0 : index
    %c0_11 = arith.constant 0 : index
    %12 = vector.load %arg6[%c0_10, %c0_11] : memref<2x8xf32, #tpu.memory_space<vmem>>, vector<2x8xf32>
    tpu.vector_store %arg6[%c0_10, %c0_11], %11 {strides = array<i32>} : memref<2x8xf32, #tpu.memory_space<vmem>>, vector<2x8xf32>,
    return
  }
  func.func @transform_0(%arg0: i32) -> (i32, i32) {
    %c0_i32 = arith.constant 0 : i32
    %c0_i32_0 = arith.constant 0 : i32
    return %c0_i32, %arg0 : i32, i32
  }
  func.func @transform_1(%arg0: i32) -> (i32, i32) {
    %c0_i32 = arith.constant 0 : i32
    %c0_i32_0 = arith.constant 0 : i32
    %c0_i32_1 = arith.constant 0 : i32
    return %c0_i32, %c0_i32_0 : i32, i32
  }
  func.func @transform_2(%arg0: i32) -> (i32, i32) {
    %c0_i32 = arith.constant 0 : i32
    %c0_i32_0 = arith.constant 0 : i32
    %c0_i32_1 = arith.constant 0 : i32
    return %c0_i32, %c0_i32_0 : i32, i32
  }
  func.func @transform_3(%arg0: i32) -> (i32, i32) {
    %c0_i32 = arith.constant 0 : i32
    %c0_i32_0 = arith.constant 0 : i32
    %c0_i32_1 = arith.constant 0 : i32
    return %c0_i32, %c0_i32_0 : i32, i32
  }
  func.func @transform_4(%arg0: i32) -> (i32, i32) {
    %c0_i32 = arith.constant 0 : i32
    %c0_i32_0 = arith.constant 0 : i32
    %c0_i32_1 = arith.constant 0 : i32
    return %c0_i32, %c0_i32_0 : i32, i32
  }
  func.func @transform_5(%arg0: i32) -> (i32, i32) {
    %c0_i32 = arith.constant 0 : i32
    %c0_i32_0 = arith.constant 0 : i32
    return %c0_i32, %arg0 : i32, i32
  }
}

</mosaic_0001>

<bundles_post_ra>
// kernel: tpu_custom_call.1
= control target key start
LH: loop header
LB: loop body
LE: loop exit
PB: predicated region body
PF: predicated region fallthrough
CT: control target
= control target key end

     0   :  { %vm63_vm0 = vcmask 1041408   ;;  %vm50_vm1 = vcmask 15360   ;;  %v196_v5 = vmov 0   ;;  %s268_s0 = inlined_call_operand.vmem [shape: f32[2,8], index: 0, kind: input, shape index: {}]   ;;  %s269_s1 = inlined_call_operand.vmem [shape: f32[32,2], index: 1, kind: input, shape index: {}]   ;;  %s270_s2 = inlined_call_operand.vmem [shape: f32[32,1], index: 2, kind: input, shape index: {}]   ;;  %s271_s3 = inlined_call_operand.vmem [shape: f32[2,32], index: 3, kind: input, shape index: {}]   ;;  %s272_s4 = inlined_call_operand.vmem [shape: f32[2,1], index: 4, kind: input, shape index: {}]   ;;  %s273_s5 = inlined_call_operand.hbm [shape: f32[2,8], index: 5, kind: output, shape index: {}]  }
   0x1   :  { %v25_v0 = vld [vmem:[%s268_s0] sm:$0x3]  ;;  %v22_v1 = vld [vmem:[%s269_s1 + $0x8] sm:$0xff]  ;;  %v24_v2 = vld [vmem:[%s269_s1 + $0x18] sm:$0xff]  ;;  %159 = vset.pattern.permute.xlu0 %v196_v5 }
   0x2   :  { %155 = vmatpush.msk.msra.mxu2 %vm63_vm0, %v25_v0  ;;  %156 = vmatpush.msk.msra.mxu3 %vm63_vm0, %v25_v0  ;;  %v29_v3 = vld [vmem:[%s270_s2 + $0x18] sm:$0xff]  ;;  %v21_v4 = vld [vmem:[%s269_s1] sm:$0xff]  ;;  %v27_v6 = vld [vmem:[%s270_s2 + $0x8] sm:$0xff] }
   0x3   :  { %151 = vmatmul.msk.f32.vlgmr.msra.gmra.mxu2 %vm50_vm1, %v22_v1  ;;  %153 = vmatmul.msk.f32.vlgmr.msra.gmra.mxu3 %vm50_vm1, %v24_v2 }
   0x4   :  { %149 = vmatpush.msk.msra.mxu0 %vm63_vm0, %v25_v0 }
   0x5   :  { %10 = vsyncpa [#allocation3], 0  ;;  %47 = vperm.xlu0 %159, %v29_v3   ;;  %150 = vmatmul.msk.f32.vlgmr.msra.gmra.mxu0 %vm50_vm1, %v21_v4  ;;  %v23_v7 = vld [vmem:[%s269_s1 + $0x10] sm:$0xff]  ;;  %v26_v9 = vld [vmem:[%s270_s2] sm:$0xff]  ;;  %vm107_vm2 = vcmask 261120   ;;  %s140_s15 = sshll.u32 %s273_s5, 4  ;;  %s141_s15 = int_to_ptr.hbm [resolvable:$true] %s140_s15 }
   0x6   :  { %160 = vset.pattern.permute.xlu1 %v196_v5  ;;  %161 = vset.pattern.permute.xlu2 %v196_v5  ;;  %v28_v8 = vld [vmem:[%s270_s2 + $0x10] sm:$0xff]  ;;  %v101_v10 = vld [vmem:[%s272_s4] sm:$0x3]  ;;  %s197_s4 = smov [#allocation2]   ;;  %vm131_vm3 = vcmask 58368  }
   0x7   :  { %37 = vperm.xlu1 %160, %v27_v6   ;;  %104 = vperm.xlu2 %161, %v101_v10   ;;  %v100_v26 = vld [vmem:[%s271_s3] sm:$0x3]  ;;  %s138_s12 = sshll.u32 %s197_s4, 4  ;;  %s139_s12 = int_to_ptr.vmem [resolvable:$true] %s138_s12 }
   0xb   :  { %152 = vmatmul.msk.f32.gmra.mxu2 %vm50_vm1, %v23_v7 }
   0xd   :  { %42 = vperm.xlu0 %159, %v28_v8  }
   0xf   :  { %32 = vperm.xlu1 %160, %v26_v9  }
  0x61   :  { %v105_v28 = vpop.permute.xlu2 %104 }
  0x77   :  { %v48_v11 = vpop.permute.xlu0 %47 }
  0x79   :  { %v38_v12 = vpop.permute.xlu1 %37 }
  0x7f   :  { %v43_v16 = vpop.permute.xlu0 %42 }
  0x81   :  { %v33_v17 = vpop.permute.xlu1 %32 }
  0x82   :  { %v84_v18 = vpop.f32.mrf.mxu0 }
  0x83   :  { %v85_v23 = vadd.f32 %v84_v18, %v33_v17 }
  0x86   :  { %v87_v13 = vpop.f32.mrf.mxu2  ;;  %v93_v14 = vpop.f32.mrf.mxu3 }
  0x87   :  { %v94_v15 = vadd.f32 %v93_v14, %v48_v11  ;;  %v88_v20 = vadd.f32 %v87_v13, %v38_v12 }
  0x89   :  { %162 = vtanh.f32 %v94_v15 }
  0x8e   :  { %v90_v19 = vpop.f32.mrf.mxu2 }
  0x8f   :  { %v91_v21 = vadd.f32 %v90_v19, %v43_v16  ;;  %v163_v22 = vpop.eup %162 }
  0x90   :  { %123 = vmatpush.msra.mxu1 %v163_v22 }
  0x91   :  { %164 = vtanh.f32 %v91_v21 }
  0x92   :  { %166 = vtanh.f32 %v88_v20 }
  0x93   :  { %168 = vtanh.f32 %v85_v23 }
  0x97   :  { %v165_v24 = vpop.eup %164 }
  0x98   :  { %124 = vmatpush.msra.mxu1 %v165_v24  ;;  %v167_v25 = vpop.eup %166 }
  0x99   :  { %v169_v27 = vpop.eup %168 }
  0x9a   :  { %125 = vmatpush.msra.mxu1 %v167_v25 }
  0x9c   :  { %126 = vmatpush.msra.mxu1 %v169_v27 }
  0x9d   :  { %154 = vmatmul.msk.f32.vlgmr.msra.gmra.mxu1 %vm107_vm2, %v100_v26 }
 0x11a   :  { %v128_v29 = vpop.f32.mrf.mxu1 }
 0x11b   :  { %v129_v30 = vadd.f32 %v128_v29, %v105_v28 }
 0x11d   :  { %132 = vst.msk [vmem:[#allocation2] sm:$0x3] %vm131_vm3, %v129_v30 }
 0x11e   :  { %143 = dma.vmem_to_hbm [thread:$0]  %s139_s12, 32, %s141_s15, [#allocation3]  }
 0x11f   :  { %194 = dma.done.wait [#allocation3], 32  }
 0x120   :  { %195 = vsyncadd [#allocation3], 4294967264 }
 0x121   :  { %148 = vsyncpa [#allocation3], 1 }

</bundles_post_ra>
